<compile_context>
chip_gen: v7x
topology: tpu7x:2x2x1
jax: 0.10.0
libtpu: 0.0.40
codegen_flags: <defaults>
</compile_context>

<pallas_src>
import functools

import jax
import jax.numpy as jnp
from jax import lax
from jax.experimental import pallas as pl
from jax.experimental.pallas import tpu as pltpu

_SQRT_HALF = 0.7071067811865476
_SQRT_2_OVER_PI = 0.7978845608028654


# ----------------------------------------------------------------------------- kernels
def _gelu_f32(h, approx):
    if approx:
        # tanh-approx GELU (torch GELU(approximate="tanh")); cheaper on v5e.
        return 0.5 * h * (1.0 + jnp.tanh(
            jnp.float32(_SQRT_2_OVER_PI) * (h + 0.044715 * h * h * h)))
    # Exact erf GELU, matching torch.nn.GELU() default.
    return 0.5 * h * (1.0 + lax.erf(h * jnp.float32(_SQRT_HALF)))


def _ffn_kernel_fused(x_ref, w1_ref, b1_ref, w2_ref, b2_ref, o_ref, *, approx):
    """Fast path: weights fully VMEM-resident; grid = (row tiles,)."""
    x = x_ref[...]                                              # (tm, C)
    h = jnp.dot(x, w1_ref[...], preferred_element_type=jnp.float32)
    h = _gelu_f32(h + b1_ref[...].astype(jnp.float32), approx)  # (tm, H) f32
    out = jnp.dot(h.astype(x.dtype), w2_ref[...],
                  preferred_element_type=jnp.float32)
    # Dropout(p=0.2): module evaluated in inference mode -> identity.
    # TODO(synk): training-mode dropout would use pltpu.prng_seed +
    #             pltpu.prng_random_bits to build the keep-mask in-kernel.
    o_ref[...] = (out + b2_ref[...].astype(jnp.float32)).astype(o_ref.dtype)


def _ffn_kernel_acc(x_ref, w1_ref, b1_ref, w2_ref, b2_ref, o_ref, acc_ref, *, approx):
    """H-chunked path: grid (row tile i, hidden chunk k), f32 VMEM accumulator."""
    k = pl.program_id(1)

    @pl.when(k == 0)
    def _init():
        acc_ref[...] = jnp.zeros_like(acc_ref)

    x = x_ref[...]                                              # (tm, C)
    h = jnp.dot(x, w1_ref[...], preferred_element_type=jnp.float32)
    h = _gelu_f32(h + b1_ref[...].astype(jnp.float32), approx)  # (tm, th) f32
    acc_ref[...] += jnp.dot(h.astype(x.dtype), w2_ref[...],
                            preferred_element_type=jnp.float32)

    @pl.when(k == pl.num_programs(1) - 1)
    def _finalize():
        # Dropout(p=0.2): eval mode -> identity (see TODO above).
        o_ref[...] = (acc_ref[...] + b2_ref[...].astype(jnp.float32)
                      ).astype(o_ref.dtype)


# ----------------------------------------------------------------------------- tiling
def _round_up(x, m):
    return (x + m - 1) // m * m


@functools.lru_cache(maxsize=1)
def _vmem_capacity_bytes():
    try:
        return int(pltpu.get_tpu_info().vmem_capacity_bytes)
    except Exception:
        return 64 * 1024 * 1024       # conservative (v7x-sized) fallback


def _th_candidates(H):
    """Divisors of H that are lane-aligned (multiples of 128), descending; H first."""
    cands = [H]
    t = (H // 128) * 128
    while t >= 128:
        if t != H and H % t == 0:
            cands.append(t)
        t -= 128
    return cands


def _footprint_bytes(tm, th, C, H, act_size, par_size, n_h):
    """Estimated VMEM footprint of one pipelined step (double-buffered tiles)."""
    buf = 2 * (act_size * tm * C                                    # x tile
               + par_size * (C * th + 8 * th + th * C + 8 * C)      # W1/b1/W2/b2
               + act_size * tm * C)                                 # out tile
    inter = tm * th * (4 + act_size)       # f32 intermediate + low-precision copy
    acc = tm * C * 4 if n_h > 1 else 0     # f32 accumulator scratch
    return buf + inter + acc


def _auto_tiles(M, C, H, act_size, par_size, sub, budget):
    """Pick (tm, th): prefer fully VMEM-resident weights, then maximize tm."""
    m_cap = _round_up(max(M, 1), sub)
    tm_cands = sorted({min(_round_up(t, sub), m_cap)
                       for t in (1024, 768, 512, 384, 256, 192, 128, 64, 32, 16, sub)},
                      reverse=True)
    th_cands = _th_candidates(H)
    best = None
    for tm in tm_cands:
        for th in th_cands:
            n_h = H // th
            if _footprint_bytes(tm, th, C, H, act_size, par_size, n_h) <= budget:
                fast = (th == H) and (tm >= min(256, m_cap))
                key = (fast, tm, th)
                if best is None or key > best[0]:
                    best = (key, tm, th)
                break                       # first fit is the largest th for this tm
    if best is None:
        return sub, th_cands[-1]
    return best[1], best[2]


# ----------------------------------------------------------------------------- wrapper
@functools.partial(jax.jit,
                   static_argnames=("tm", "th", "compute_dtype", "approx_gelu"))
def expert_forward(x, w1, b1, w2, b2, *, tm=None, th=None,
                   compute_dtype=jnp.bfloat16, approx_gelu=False):
    """x: (B, T, C) -> (B, T, C); Expert(n_embds).forward(x) in eval mode.

    compute_dtype: dtype used on the MXU (weights/activations cast to it; f32
    accumulation always).  Default bf16 for MXU peak; pass jnp.float32 / None for
    exact parity with the f32 torch reference.
    """
    B, T, C = x.shape
    H = w1.shape[1]                      # 4 * C
    M = B * T

    out_dtype = x.dtype
    cdt = jnp.dtype(x.dtype) if compute_dtype is None else jnp.dtype(compute_dtype)
    act_size = cdt.itemsize
    par_size = cdt.itemsize
    sub = max(8, 32 // act_size)         # sublane multiple: 8 f32 / 16 bf16 / 32 int8

    vmem_cap = _vmem_capacity_bytes()
    # Leave headroom for compiler-internal scratch: ~56 MiB budget on v7x (64 MiB),
    # ~112 MiB on v5e/v6e (128 MiB).
    budget = vmem_cap - max(8 << 20, vmem_cap // 8)

    auto_tm, auto_th = _auto_tiles(M, C, H, act_size, par_size, sub, budget)

    # --- row tile (dtype-aware sublane rounding, padded rows instead of asserts)
    if tm is None:
        tm = auto_tm
    else:
        tm = max(sub, _round_up(min(int(tm), 1024), sub))
        tm = min(tm, _round_up(M, sub))
    n_tiles = -(-M // tm)
    tm = min(tm, max(sub, _round_up(-(-M // n_tiles), sub)))   # rebalance to cut padding
    M_pad = _round_up(M, tm)

    # --- hidden-dim tile: lane-aligned multiple of 128 dividing H (or H itself)
    if th is None:
        th = auto_th
    else:
        th = max(128, min(int(th), H))
        th = (th // 128) * 128
        if th <= 0 or H % th != 0:
            th = H
    n_h = H // th

    # --- operands (bf16 cast for the MXU when requested; biases stay as-is)
    x2d = x.reshape(M, C).astype(cdt)
    if M_pad != M:
        x2d = jnp.pad(x2d, ((0, M_pad - M), (0, 0)))
    w1c = w1.astype(cdt)
    w2c = w2.astype(cdt)
    b1_2d = b1.reshape(1, H)
    b2_2d = b2.reshape(1, C)

    # --- VMEM request: cover the footprint, never exceed physical capacity.
    fp = _footprint_bytes(tm, th, C, H, act_size, par_size, n_h)
    vmem_limit = int(min(vmem_cap - (2 << 20), max(32 << 20, fp + (8 << 20))))

    # --- cost estimate (weights re-read once per row tile on the accumulator path)
    n_row = M_pad // tm
    bias_size = jnp.dtype(b1.dtype).itemsize
    weight_bytes = (2 * C * H * par_size * (1 if n_h == 1 else n_row)
                    + (H + C) * bias_size)
    cost = pl.CostEstimate(
        flops=4 * M_pad * C * H,
        transcendentals=M_pad * H,
        bytes_accessed=int(act_size * M_pad * C
                           + jnp.dtype(out_dtype).itemsize * M_pad * C
                           + weight_bytes),
    )

    if n_h == 1:
        # Fast path: constant weight index maps -> W1/W2 DMA'd once for the call.
        grid = (n_row,)
        in_specs = [
            pl.BlockSpec((tm, C), lambda i: (i, 0)),    # x row tile
            pl.BlockSpec((C, H), lambda i: (0, 0)),     # W1 (resident)
            pl.BlockSpec((1, H), lambda i: (0, 0)),     # b1
            pl.BlockSpec((H, C), lambda i: (0, 0)),     # W2 (resident)
            pl.BlockSpec((1, C), lambda i: (0, 0)),     # b2
        ]
        out_specs = pl.BlockSpec((tm, C), lambda i: (i, 0))
        scratch = []
        kernel = functools.partial(_ffn_kernel_fused, approx=approx_gelu)
        dims = ("parallel",)
    else:
        # Serpentine H walk: odd row tiles reverse k so the boundary weight chunk
        # is reused instead of re-DMA'd.
        def _serp(i, k):
            return k + (i % 2) * (n_h - 1 - 2 * k)

        grid = (n_row, n_h)
        in_specs = [
            pl.BlockSpec((tm, C), lambda i, k: (i, 0)),             # x row tile
            pl.BlockSpec((C, th), lambda i, k: (0, _serp(i, k))),   # W1 H-chunk
            pl.BlockSpec((1, th), lambda i, k: (0, _serp(i, k))),   # b1 H-chunk
            pl.BlockSpec((th, C), lambda i, k: (_serp(i, k), 0)),   # W2 H-chunk
            pl.BlockSpec((1, C), lambda i, k: (0, 0)),              # b2
        ]
        out_specs = pl.BlockSpec((tm, C), lambda i, k: (i, 0))
        scratch = [pltpu.VMEM((tm, C), jnp.float32)]                # f32 accumulator
        kernel = functools.partial(_ffn_kernel_acc, approx=approx_gelu)
        # TODO(synk): on v7x megacore, sharding the H axis across the two
        #             TensorCores (core_map + cross-core reduce) would halve
        #             per-core weight HBM traffic.
        dims = ("parallel", "arbitrary")

    out2d = pl.pallas_call(
        kernel,
        out_shape=jax.ShapeDtypeStruct((M_pad, C), out_dtype),
        grid_spec=pltpu.PrefetchScalarGridSpec(
            num_scalar_prefetch=0,
            grid=grid,
            in_specs=in_specs,
            out_specs=out_specs,
            scratch_shapes=scratch,
        ),
        compiler_params=pltpu.CompilerParams(
            dimension_semantics=dims,
            vmem_limit_bytes=vmem_limit,
        ),
        cost_estimate=cost,
    )(x2d, w1c, b1_2d, w2c, b2_2d)

    if M_pad != M:
        out2d = out2d[:M]
    return out2d.reshape(B, T, C)


# ----------------------------------------------------------------------------- params
def init_expert_params(key, n_embds, dtype=jnp.float32):
    """nn.Linear-style init (uniform +/- 1/sqrt(fan_in)); weights in (in, out)."""
    h = 4 * n_embds
    k1, k2, k3, k4 = jax.random.split(key, 4)
    lim1 = 1.0 / jnp.sqrt(n_embds)
    lim2 = 1.0 / jnp.sqrt(h)
    w1 = jax.random.uniform(k1, (n_embds, h), dtype, -lim1, lim1)
    b1 = jax.random.uniform(k2, (h,), dtype, -lim1, lim1)
    w2 = jax.random.uniform(k3, (h, n_embds), dtype, -lim2, lim2)
    b2 = jax.random.uniform(k4, (n_embds,), dtype, -lim2, lim2)
    return w1, b1, w2, b2


if __name__ == "__main__":
    # Small, TPU-friendly shapes: batch=2, seq=12, n_embds=128 (lane-aligned),
    # hidden = 4*128 = 512.  M = 24 rows exercises the padding path.
    B, T, C = 2, 12, 128

    key = jax.random.PRNGKey(0)
    kx, kp = jax.random.split(key)
    x = jax.random.normal(kx, (B, T, C), jnp.float32)
    w1, b1, w2, b2 = init_expert_params(kp, C)

    # Plain-JAX reference of the same math (erf GELU, eval-mode dropout).
    h_ref = jnp.dot(x.reshape(-1, C), w1) + b1
    h_ref = 0.5 * h_ref * (1.0 + lax.erf(h_ref * jnp.float32(_SQRT_HALF)))
    ref = (jnp.dot(h_ref, w2) + b2).reshape(B, T, C)

    # (1) accumulator path (2 row tiles x 2 serpentine H-chunks), exact f32 compute.
    out_acc = jax.block_until_ready(
        expert_forward(x, w1, b1, w2, b2, tm=16, th=256,
                       compute_dtype=jnp.float32))
    # (2) auto-tiled fast path (weights VMEM-resident), exact f32 compute.
    out_fast = jax.block_until_ready(
        expert_forward(x, w1, b1, w2, b2, compute_dtype=jnp.float32))
    # (3) production default: bf16 on the MXU, f32 accumulation (looser tolerance).
    out_bf16 = jax.block_until_ready(expert_forward(x, w1, b1, w2, b2))

    assert out_acc.shape == (B, T, C)
    assert out_fast.shape == (B, T, C)
    assert out_bf16.shape == (B, T, C)
    assert jnp.allclose(out_acc, ref, atol=1e-4, rtol=1e-4)
    assert jnp.allclose(out_fast, ref, atol=1e-4, rtol=1e-4)
    assert jnp.allclose(out_bf16, ref, atol=3e-2, rtol=3e-2)

    print("KERNEL_OK")
</pallas_src>

<mosaic_0001>
module attributes {stable_mosaic.version = 11 : i64} {
  func.func @_ffn_kernel_acc(%arg0: i32, %arg1: i32, %arg2: memref<16x128xf32, #tpu.memory_space<vmem>>, %arg3: memref<128x256xf32, #tpu.memory_space<vmem>>, %arg4: memref<1x256xf32, #tpu.memory_space<vmem>>, %arg5: memref<256x128xf32, #tpu.memory_space<vmem>>, %arg6: memref<1x128xf32, #tpu.memory_space<vmem>>, %arg7: memref<16x128xf32, #tpu.memory_space<vmem>>, %arg8: memref<16x128xf32, #tpu.memory_space<vmem>>) attributes {dimension_semantics = [#tpu.dimension_semantics<parallel>, #tpu.dimension_semantics<arbitrary>], iteration_bounds = array<i64: 2, 2>, scalar_prefetch = 0 : i64, scratch_operands = 1 : i64, tpu.core_type = #tpu.core_type<tc>, window_params = [{transform_indices = @transform_0, window_bounds = array<i64: 16, 128>}, {transform_indices = @transform_1, window_bounds = array<i64: 128, 256>}, {transform_indices = @transform_2, window_bounds = array<i64: 1, 256>}, {transform_indices = @transform_3, window_bounds = array<i64: 256, 128>}, {pipeline_mode = #tpu.pipeline_mode<synchronous>, transform_indices = @transform_4, window_bounds = array<i64: 1, 128>}, {transform_indices = @transform_5, window_bounds = array<i64: 16, 128>}]} {
    %c0_i32 = arith.constant 0 : i32
    %0 = arith.cmpi eq, %arg1, %c0_i32 : i32
    %1 = arith.extui %0 : i1 to i32
    %c0_i32_0 = arith.constant 0 : i32
    %2 = arith.cmpi ne, %1, %c0_i32_0 : i32
    scf.if %2 {
      %cst_17 = arith.constant 0.000000e+00 : f32
      %25 = vector.broadcast %cst_17 : f32 to vector<16x128xf32>
      %c0_18 = arith.constant 0 : index
      %c0_19 = arith.constant 0 : index
      %26 = vector.load %arg8[%c0_18, %c0_19] : memref<16x128xf32, #tpu.memory_space<vmem>>, vector<16x128xf32>
      tpu.vector_store %arg8[%c0_18, %c0_19], %25 {strides = array<i32>} : memref<16x128xf32, #tpu.memory_space<vmem>>, vector<16x128xf32>,
    } else {
    }
    %c0 = arith.constant 0 : index
    %c0_1 = arith.constant 0 : index
    %3 = vector.load %arg2[%c0, %c0_1] : memref<16x128xf32, #tpu.memory_space<vmem>>, vector<16x128xf32>
    %c0_2 = arith.constant 0 : index
    %c0_3 = arith.constant 0 : index
    %4 = vector.load %arg3[%c0_2, %c0_3] : memref<128x256xf32, #tpu.memory_space<vmem>>, vector<128x256xf32>
    %cst = arith.constant dense<0.000000e+00> : vector<16x256xf32>
    %5 = tpu.matmul %3, %4, %cst {dimension_numbers = #tpu.dot_dimension_numbers<[1], [0], [0], [1], [0, 0, 1, 1], [], []>} : vector<16x128xf32>, vector<128x256xf32>, vector<16x256xf32> -> vector<16x256xf32>
    %c0_4 = arith.constant 0 : index
    %c0_5 = arith.constant 0 : index
    %6 = vector.load %arg4[%c0_4, %c0_5] : memref<1x256xf32, #tpu.memory_space<vmem>>, vector<1x256xf32>
    %7 = vector.broadcast %6 : vector<1x256xf32> to vector<16x256xf32>
    %8 = arith.addf %5, %7 : vector<16x256xf32>
    %cst_6 = arith.constant 5.000000e-01 : f32
    %9 = vector.broadcast %cst_6 : f32 to vector<16x256xf32>
    %10 = arith.mulf %9, %8 : vector<16x256xf32>
    %cst_7 = arith.constant 0.707106769 : f32
    %11 = vector.broadcast %cst_7 : f32 to vector<16x256xf32>
    %12 = arith.mulf %8, %11 : vector<16x256xf32>
    %13 = math.erf %12 : vector<16x256xf32>
    %cst_8 = arith.constant 1.000000e+00 : f32
    %14 = vector.broadcast %cst_8 : f32 to vector<16x256xf32>
    %15 = arith.addf %14, %13 : vector<16x256xf32>
    %16 = arith.mulf %10, %15 : vector<16x256xf32>
    %c0_9 = arith.constant 0 : index
    %c0_10 = arith.constant 0 : index
    %17 = vector.load %arg8[%c0_9, %c0_10] : memref<16x128xf32, #tpu.memory_space<vmem>>, vector<16x128xf32>
    %c0_11 = arith.constant 0 : index
    %c0_12 = arith.constant 0 : index
    %18 = vector.load %arg5[%c0_11, %c0_12] : memref<256x128xf32, #tpu.memory_space<vmem>>, vector<256x128xf32>
    %cst_13 = arith.constant dense<0.000000e+00> : vector<16x128xf32>
    %19 = tpu.matmul %16, %18, %cst_13 {dimension_numbers = #tpu.dot_dimension_numbers<[1], [0], [0], [1], [0, 0, 1, 1], [], []>} : vector<16x256xf32>, vector<256x128xf32>, vector<16x128xf32> -> vector<16x128xf32>
    %20 = arith.addf %17, %19 : vector<16x128xf32>
    %c0_14 = arith.constant 0 : index
    %c0_15 = arith.constant 0 : index
    %21 = vector.load %arg8[%c0_14, %c0_15] : memref<16x128xf32, #tpu.memory_space<vmem>>, vector<16x128xf32>
    tpu.vector_store %arg8[%c0_14, %c0_15], %20 {strides = array<i32>} : memref<16x128xf32, #tpu.memory_space<vmem>>, vector<16x128xf32>,
    %c1_i32 = arith.constant 1 : i32
    %22 = arith.cmpi eq, %arg1, %c1_i32 : i32
    %23 = arith.extui %22 : i1 to i32
    %c0_i32_16 = arith.constant 0 : i32
    %24 = arith.cmpi ne, %23, %c0_i32_16 : i32
    scf.if %24 {
      %c0_17 = arith.constant 0 : index
      %c0_18 = arith.constant 0 : index
      %25 = vector.load %arg8[%c0_17, %c0_18] : memref<16x128xf32, #tpu.memory_space<vmem>>, vector<16x128xf32>
      %c0_19 = arith.constant 0 : index
      %c0_20 = arith.constant 0 : index
      %26 = vector.load %arg6[%c0_19, %c0_20] : memref<1x128xf32, #tpu.memory_space<vmem>>, vector<1x128xf32>
      %27 = vector.broadcast %26 : vector<1x128xf32> to vector<16x128xf32>
      %28 = arith.addf %25, %27 : vector<16x128xf32>
      %c0_21 = arith.constant 0 : index
      %c0_22 = arith.constant 0 : index
      %29 = vector.load %arg7[%c0_21, %c0_22] : memref<16x128xf32, #tpu.memory_space<vmem>>, vector<16x128xf32>
      tpu.vector_store %arg7[%c0_21, %c0_22], %28 {strides = array<i32>} : memref<16x128xf32, #tpu.memory_space<vmem>>, vector<16x128xf32>,
    } else {
    }
    return
  }
  func.func @transform_0(%arg0: i32, %arg1: i32) -> (i32, i32) {
    %c0_i32 = arith.constant 0 : i32
    %c0_i32_0 = arith.constant 0 : i32
    return %arg0, %c0_i32 : i32, i32
  }
  func.func @transform_1(%arg0: i32, %arg1: i32) -> (i32, i32) {
    %c2_i32 = arith.constant 2 : i32
    %c0_i32 = arith.constant 0 : i32
    %0 = arith.cmpi eq, %c2_i32, %c0_i32 : i32
    %c1_i32 = arith.constant 1 : i32
    %1 = arith.select %0, %c1_i32, %c2_i32 : i32
    %2 = arith.remsi %arg0, %1 : i32
    %c0_i32_0 = arith.constant 0 : i32
    %3 = arith.cmpi ne, %2, %c0_i32_0 : i32
    %c0_i32_1 = arith.constant 0 : i32
    %4 = arith.cmpi slt, %2, %c0_i32_1 : i32
    %c0_i32_2 = arith.constant 0 : i32
    %5 = arith.cmpi slt, %1, %c0_i32_2 : i32
    %6 = arith.xori %4, %5 : i1
    %7 = arith.andi %6, %3 : i1
    %8 = arith.addi %2, %1 : i32
    %9 = arith.select %7, %8, %2 : i32
    %c2_i32_3 = arith.constant 2 : i32
    %10 = arith.muli %c2_i32_3, %arg1 : i32
    %c1_i32_4 = arith.constant 1 : i32
    %11 = arith.subi %c1_i32_4, %10 : i32
    %12 = arith.muli %9, %11 : i32
    %13 = arith.addi %arg1, %12 : i32
    %c0_i32_5 = arith.constant 0 : i32
    %c0_i32_6 = arith.constant 0 : i32
    return %c0_i32_5, %13 : i32, i32
  }
  func.func @transform_2(%arg0: i32, %arg1: i32) -> (i32, i32) {
    %c2_i32 = arith.constant 2 : i32
    %c0_i32 = arith.constant 0 : i32
    %0 = arith.cmpi eq, %c2_i32, %c0_i32 : i32
    %c1_i32 = arith.constant 1 : i32
    %1 = arith.select %0, %c1_i32, %c2_i32 : i32
    %2 = arith.remsi %arg0, %1 : i32
    %c0_i32_0 = arith.constant 0 : i32
    %3 = arith.cmpi ne, %2, %c0_i32_0 : i32
    %c0_i32_1 = arith.constant 0 : i32
    %4 = arith.cmpi slt, %2, %c0_i32_1 : i32
    %c0_i32_2 = arith.constant 0 : i32
    %5 = arith.cmpi slt, %1, %c0_i32_2 : i32
    %6 = arith.xori %4, %5 : i1
    %7 = arith.andi %6, %3 : i1
    %8 = arith.addi %2, %1 : i32
    %9 = arith.select %7, %8, %2 : i32
    %c2_i32_3 = arith.constant 2 : i32
    %10 = arith.muli %c2_i32_3, %arg1 : i32
    %c1_i32_4 = arith.constant 1 : i32
    %11 = arith.subi %c1_i32_4, %10 : i32
    %12 = arith.muli %9, %11 : i32
    %13 = arith.addi %arg1, %12 : i32
    %c0_i32_5 = arith.constant 0 : i32
    %c0_i32_6 = arith.constant 0 : i32
    return %c0_i32_5, %13 : i32, i32
  }
  func.func @transform_3(%arg0: i32, %arg1: i32) -> (i32, i32) {
    %c2_i32 = arith.constant 2 : i32
    %c0_i32 = arith.constant 0 : i32
    %0 = arith.cmpi eq, %c2_i32, %c0_i32 : i32
    %c1_i32 = arith.constant 1 : i32
    %1 = arith.select %0, %c1_i32, %c2_i32 : i32
    %2 = arith.remsi %arg0, %1 : i32
    %c0_i32_0 = arith.constant 0 : i32
    %3 = arith.cmpi ne, %2, %c0_i32_0 : i32
    %c0_i32_1 = arith.constant 0 : i32
    %4 = arith.cmpi slt, %2, %c0_i32_1 : i32
    %c0_i32_2 = arith.constant 0 : i32
    %5 = arith.cmpi slt, %1, %c0_i32_2 : i32
    %6 = arith.xori %4, %5 : i1
    %7 = arith.andi %6, %3 : i1
    %8 = arith.addi %2, %1 : i32
    %9 = arith.select %7, %8, %2 : i32
    %c2_i32_3 = arith.constant 2 : i32
    %10 = arith.muli %c2_i32_3, %arg1 : i32
    %c1_i32_4 = arith.constant 1 : i32
    %11 = arith.subi %c1_i32_4, %10 : i32
    %12 = arith.muli %9, %11 : i32
    %13 = arith.addi %arg1, %12 : i32
    %c0_i32_5 = arith.constant 0 : i32
    %c0_i32_6 = arith.constant 0 : i32
    return %13, %c0_i32_5 : i32, i32
  }
  func.func @transform_4(%arg0: i32, %arg1: i32) -> (i32, i32) {
    %c0_i32 = arith.constant 0 : i32
    %c0_i32_0 = arith.constant 0 : i32
    %c0_i32_1 = arith.constant 0 : i32
    return %c0_i32, %c0_i32_0 : i32, i32
  }
  func.func @transform_5(%arg0: i32, %arg1: i32) -> (i32, i32) {
    %c0_i32 = arith.constant 0 : i32
    %c0_i32_0 = arith.constant 0 : i32
    return %arg0, %c0_i32 : i32, i32
  }
}

</mosaic_0001>

<bundles_post_ra>
// kernel: expert_forward.1
= control target key start
LH: loop header
LB: loop body
LE: loop exit
PB: predicated region body
PF: predicated region fallthrough
CT: control target
= control target key end

     0   :  { %s1722_s0 = inlined_call_operand.vmem [shape: f32[32,128], index: 0, kind: input, shape index: {}]   ;;  %s1723_s1 = inlined_call_operand.hbm [shape: f32[128,512], index: 1, kind: input, shape index: {}]   ;;  %s1724_s2 = inlined_call_operand.vmem [shape: f32[1,512], index: 2, kind: input, shape index: {}]   ;;  %s1725_s3 = inlined_call_operand.hbm [shape: f32[512,128], index: 3, kind: input, shape index: {}]   ;;  %s1726_s4 = inlined_call_operand.vmem [shape: f32[1,128], index: 4, kind: input, shape index: {}]   ;;  %s1727_s5 = inlined_call_operand.vmem [shape: f32[32,128], index: 5, kind: output, shape index: {}]  }
   0x1   :  { %1732 = sst [smem:[#allocation11_spill]] %s1723_s1 }
   0x2   :  { %10 = vsyncpa [#allocation4], 0 }
   0x3   :  { %12 = vsyncpa [#allocation4 + $0x1], 0 }
   0x4   :  { %13 = vsyncpa [#allocation6], 0 }
   0x5   :  { %15 = vsyncpa [#allocation6 + $0x1], 0  ;;  %s1410_s18 = smov 0   ;;  %s1412_s19 = smov 0  }
   0x6   :  { %s1414_s20 = smov 0   ;;  %s1416_s21 = smov 0  }
   0x7   :  { %s1418_s22 = smov 0   ;;  %s1420_s23 = smov 0  }
   0x8   :  { %s1422_s24 = smov 0   ;;  %s1424_s25 = smov 0  }
   0x9 LB: > { %s985_s26 = sadd.s32 4294967295, %s1369_s25   ;;  %s30_s27 = sadd.s32 1, %s1361_s23  ;;  %s1369_s25 = sphi %s1424_s25, %s21_s25   ;;  %s1365_s24 = sphi %s1422_s24, %s1752_s24   ;;  %s1361_s23 = sphi %s1420_s23, %s1751_s23   ;;  %s1357_s22 = sphi %s1418_s22, %s1750_s22   ;;  %s1353_s21 = sphi %s1416_s21, %s1749_s21   ;;  %s1349_s20 = sphi %s1414_s20, %s1748_s20   ;;  %s1345_s19 = sphi %s1412_s19, %s1747_s19   ;;  %s1341_s18 = sphi %s1410_s18, %s1746_s18  }
   0xa   : > { %p31_p0 = scmp.ge.s32.totalorder %s30_s27, 2  ;;  %s33_s28 = sadd.s32 1, %s1365_s24 }
   0xb   : > { %s64_s29 = ssub.s32 0, %s1365_s24  ;;  %s990_s6 = sshll.u32 %s1361_s23, 1 }
   0xc   : > { %s1754_s27 = smov (%p31_p0, %s30_s27), 0  ;;  %s1756_s28 = smov (!%p31_p0, %s33_s28), %s1365_s24 }
   0xd   : > { %1733 = sst [smem:[#allocation9_spill]] %s1754_s27  ;;  %s987_s30 = smin.u32 %s1365_s24, %s64_s29 }
   0xe   : > { %p35_p1 = scmp.ge.s32.totalorder %s1756_s28, 2  ;;  %s66_s7 = sand.u32 1, %s987_s30  }
   0xf   : > { %s76_s8 = ssub.s32 1, %s990_s6  ;;  %p989_p2 = scmp.lt.s32.totalorder %s66_s7, 0 }
  0x10   : > { %s1758_s28 = smov (%p35_p1, %s1756_s28), 0  ;;  %s73_s10 = sadd.s32 2, %s66_s7 }
  0x11   : > { %1734 = sst [smem:[#allocation10_spill]] %s1758_s28  ;;  %s80_s9 = ssub.s32 0, %s1758_s28 }
  0x12   : > { %s991_s11 = smin.u32 %s80_s9, %s1758_s28  ;;  %s994_s12 = sshll.u32 %s1754_s27, 1 }
  0x13   : > { %s1760_s10 = smov (!%p989_p2, %s73_s10), %s66_s7  ;;  %s82_s13 = sand.u32 1, %s991_s11  }
  0x14   : > { %s92_s14 = ssub.s32 1, %s994_s12  ;;  %s77_s15 = smul.u32 %s76_s8, %s1760_s10 }
  0x15   : > { %s98_s17 = sadd.s32 1, %s1349_s20  ;;  %p993_p3 = scmp.lt.s32.totalorder %s82_s13, 0 }
  0x16   : > { %s1465_s16 = sadd.s32 %s1361_s23, %s77_s15  ;;  %s89_s29 = sadd.s32 2, %s82_s13 }
  0x17   : > { %p105_p4 = scmp.ne.s32.totalorder %s1349_s20, %s1345_s19  ;;  %p106_p5 = scmp.eq.s32.totalorder %s1369_s25, 0 }
  0x18   : > { %s1762_s29 = smov (!%p993_p3, %s89_s29), %s82_s13  ;;  %p111_p7 = scmp.ne.s32.totalorder %s1345_s19, %s1341_s18 }
  0x19   : > { %p1471_p6 = por %p106_p5, %p105_p4  ;;  %s93_s6 = smul.u32 %s92_s14, %s1762_s29 }
  0x1a   : > { %p112_p8 = scmp.eq.s32.totalorder %s985_s26, 0  ;;  %p1159_p9 = scmp.lt.s32.totalorder %s1369_s25, 4 }
  0x1b   : > { %s94_s7 = sadd.s32 %s93_s6, %s1754_s27  ;;  %s1487_s10 = sand.u32 1, %s1349_s20  }
  0x1c   : > { %p1481_p10 = por %p112_p8, %p111_p7  ;;  %s95_s9 = ssub.s32 %s1465_s16, %s94_s7 }
  0x1d   : > { %p96_p11 = scmp.eq.s32.totalorder %s95_s9, 0  ;;  %s1728_s11 = sshll.u32 %s1487_s10, 8 }
  0x1e   : > { %s1736_s8 = scalar_select %p1481_p10, 1, 0 }
  0x1f   : > { %s1044_s12 = sshll.u32 %s1465_s16, 8  ;;  %s1737_s1 = sld [smem:[#allocation11_spill]] }
  0x20   : > { %s1492_s18 = scalar_select %p96_p11, %s1349_s20, %s98_s17  }
  0x21   : > { %s314_s15 = scalar_lea.vmem [#allocation3], %s1728_s11  ;;  %p1503_p12 = pnand %p1159_p9, %p1471_p6 }
  0x22   : > { %s337_s29 = sshll.u32 %s314_s15, 4  ;;  %s311_s17 = scalar_lea.sflag [#allocation4], %s1487_s10  ;;  %s1507_s29 = int_to_ptr.vmem [resolvable:$true] %s337_s29 }
  0x23   : > { %p1241_p1 = pneg %p1503_p12 }
  0x25   : > { %s1497_s26 = scalar_lea.hbm %s1737_s1, %s1044_s12  ;;  %s1244_s12 = scalar_lea.hbm %s1737_s1, 8192 }
  0x26   : > { %s1239_s7 = scalar_lea.hbm %s1497_s26, 4096  ;;  %p1245_p4 = scmp.lt.u32.totalorder %s1497_s26, %s1737_s1 }
  0x27   : > { %p1240_p0 = scmp.ne.s32.totalorder %s1497_s26, %s1239_s7  ;;  %p1246_p5 = scmp.lt.u32.totalorder %s1244_s12, %s1239_s7 }
  0x28   : > { %p1248_p7 = scmp.lt.u32.totalorder %s1239_s7, %s1497_s26 }
  0x29   : > { %p1242_p2 = pnand %p1241_p1, %p1240_p0  ;;  %p1247_p6 = por %p1246_p5, %p1245_p4 }
  0x2b   : > { %p1243_p3 = pneg %p1242_p2  ;;  %p1249_p8 = por %p1248_p7, %p1247_p6 }
  0x2d   : > { %p1250_p9 = pnand %p1249_p8, %p1243_p3 }
  0x2f   : > { %1253 = shalt.err (!%p1250_p9)
}
  0x30   : > { %s1254_s15 = scalar_lea.vmem %s1507_s29, 4096  ;;  %s1371_s9 = smov [#allocation3]  }
  0x31   : > { %p1255_p11 = scmp.ne.s32.totalorder %s1507_s29, %s1254_s15  ;;  %s1259_s30 = sshll.u32 %s1371_s9, 4  ;;  %s1260_s30 = int_to_ptr.vmem [resolvable:$false] %s1259_s30 }
  0x32   : > { %s1261_s13 = scalar_lea.vmem %s1260_s30, 8192  ;;  %p1262_p13 = scmp.lt.s32.totalorder %s1507_s29, %s1260_s30 }
  0x33   : > { %p1257_p0 = pnand %p1255_p11, %p1241_p1  ;;  %p1263_p4 = scmp.lt.s32.totalorder %s1261_s13, %s1254_s15 }
  0x35   : > { %p1258_p2 = pneg %p1257_p0  ;;  %p1264_p5 = por %p1263_p4, %p1262_p13 }
  0x37   : > { %p1265_p6 = pnand %p1264_p5, %p1258_p2 }
  0x39   : > { %1268 = shalt.err (!%p1265_p6)
}
  0x3a   : > { %s1372_s7 = smov 512   ;;  %s1373_s12 = smov 256  }
  0x3b   : > { %s1374_s14 = smov 16   ;;  %p422_p3 = scmp.lt.s32.totalorder %s1369_s25, 5 }
  0x3c   : > { %1155 = dma.hbm_to_vmem [thread:$0]  (!%p1503_p12), %s1497_s26, 4096, %s1507_s29, %s311_s17, %s1372_s7, %s1373_s12, %s1374_s14  }
  0x3d   : > { %s1045_s15 = sshll.u32 %s1465_s16, 12  ;;  %p1739_p13 = scmp.ge.s32.totalorder %s1369_s25, 1 }
  0x3e   : > { %s1549_s11 = scalar_lea.hbm %s1725_s3, %s1045_s15  ;;  %s1741_s1 = sshll.u32 %s1487_s10, 8 }
  0x3f   : > { %p1542_p7 = pnand %p1739_p13, %p422_p3  ;;  %s391_s28 = scalar_lea.vmem [#allocation5], %s1741_s1 }
  0x40   : > { %s414_s27 = sshll.u32 %s391_s28, 4  ;;  %s388_s16 = scalar_lea.sflag [#allocation6], %s1487_s10  ;;  %s1553_s27 = int_to_ptr.vmem [resolvable:$true] %s414_s27 }
  0x41   : > { %s1269_s26 = scalar_lea.hbm %s1549_s11, 4096  ;;  %s1274_s7 = scalar_lea.hbm %s1725_s3, 8192 }
  0x42   : > { %p1270_p8 = scmp.ne.s32.totalorder %s1549_s11, %s1269_s26  ;;  %p1275_p0 = scmp.lt.u32.totalorder %s1549_s11, %s1725_s3 }
  0x43   : > { %p1276_p2 = scmp.lt.u32.totalorder %s1274_s7, %s1269_s26  ;;  %p1278_p5 = scmp.lt.u32.totalorder %s1269_s26, %s1549_s11 }
  0x44   : > { %p1272_p9 = pnand %p1270_p8, %p1241_p1 }
  0x45   : > { %p1277_p4 = por %p1276_p2, %p1275_p0 }
  0x46   : > { %p1273_p11 = pneg %p1272_p9 }
  0x47   : > { %p1279_p6 = por %p1278_p5, %p1277_p4 }
  0x49   : > { %p1280_p3 = pnand %p1279_p6, %p1273_p11 }
  0x4b   : > { %1283 = shalt.err (!%p1280_p3)
}
  0x4c   : > { %s1284_s1 = scalar_lea.vmem %s1553_s27, 4096  ;;  %s1375_s28 = smov [#allocation5]  }
  0x4d   : > { %p1285_p13 = scmp.ne.s32.totalorder %s1553_s27, %s1284_s1  ;;  %s1289_s15 = sshll.u32 %s1375_s28, 4  ;;  %s1290_s15 = int_to_ptr.vmem [resolvable:$false] %s1289_s15 }
  0x4e   : > { %s1291_s30 = scalar_lea.vmem %s1290_s15, 8192  ;;  %p1292_p10 = scmp.lt.s32.totalorder %s1553_s27, %s1290_s15 }
  0x4f   : > { %p1287_p8 = pnand %p1285_p13, %p1241_p1  ;;  %p1293_p0 = scmp.lt.s32.totalorder %s1291_s30, %s1284_s1 }
  0x51   : > { %p1288_p9 = pneg %p1287_p8  ;;  %p1294_p2 = por %p1293_p0, %p1292_p10 }
  0x53   : > { %p1295_p4 = pnand %p1294_p2, %p1288_p9 }
  0x55   : > { %1298 = shalt.err (!%p1295_p4)
}
  0x56   : > { %s1376_s13 = smov 128   ;;  %s1377_s26 = smov 8  }
  0x57   : > { %1158 = dma.hbm_to_vmem [thread:$0]  (!%p1503_p12), %s1549_s11, 4096, %s1553_s27, %s388_s16, %s1376_s13, %s1376_s13, %s1377_s26  }
  0x58   : > { %426 = sbr.rel (%p1542_p7) target bundleno = 616 (0x268), region = 40  ;;  %s428_s29 = sand.u32 (!%p1542_p7), 1, %s1345_s19  }
  0x59   : > { %s1028_s17 = sshll.u32 (!%p1542_p7), %s428_s29, 8  ;;  %s429_s7 = scalar_lea.sflag (!%p1542_p7), [#allocation4], %s428_s29 }
  0x5a   : > { %s1584_s12 = scalar_lea.vmem (!%p1542_p7), [#allocation3], %s1028_s17  ;;  %p1742_p10 = scmp.ne.s32.totalorder (!%p1542_p7), %s1736_s8, 0 }
  0x5f   : > { %1332 = dma.done.wait (%p1742_p10), %s429_s7, 4096  }
  0x60   : > { %1334 = vsyncadd (%p1742_p10), %s429_s7, 4294963200  ;;  %s438_s14 = scalar_lea.sflag [#allocation6], %s428_s29  ;;  %s1590_s6 = scalar_lea.vmem [#allocation5], %s1028_s17 }
  0x61   : > { %1336 = dma.done.wait (%p1742_p10), %s438_s14, 4096  }
  0x62   : > { %1338 = vsyncadd (%p1742_p10), %s438_s14, 4294963200  ;;  %s1030_s27 = sshll.u32 %s1357_s22, 1  ;;  %s522_s10 = ssub.s32 0, %s1357_s22 }
  0x63   : > { %p499_p12 = scmp.lt.s32.totalorder %s1030_s27, 3  ;;  %p521_p1 = scmp.lt.s32.totalorder %s1357_s22, 0 }
  0x64   : > { %s1032_s11 = smin.u32 %s1357_s22, %s522_s10  ;;  %s1035_s16 = sshll.u32 %s1353_s21, 1 }
  0x65   : > { %s1764_s27 = smov (!%p499_p12, %s1030_s27), 3  ;;  %s524_s9 = sand.u32 1, %s1032_s11  }
  0x66   : > { %s1031_s1 = sshll.u32 %s1764_s27, 3  ;;  %s525_s28 = ssub.s32 0, %s524_s9 }
  0x67   : > { %s1604_s8 = scalar_lea.vmem %s1722_s0, %s1031_s1  ;;  %s1609_s29 = scalar_lea.vmem %s1727_s5, %s1031_s1 }
  0x68   : > { %s1766_s28 = smov (!%p521_p1, %s525_s28), %s524_s9  ;;  %s534_s7 = ssub.s32 1, %s1035_s16 }
  0x69   : > { %p1034_p7 = scmp.lt.s32.totalorder %s1766_s28, 0  ;;  %s531_s17 = sadd.s32 2, %s1766_s28 }
  0x6a   : > { %p1039_p5 = scmp.ne.s32.totalorder %s1353_s21, 0 }
  0x6b   : > { %s1768_s17 = smov (!%p1034_p7, %s531_s17), %s1766_s28  ;;  %v1378_v0 = vmov (!%p1039_p5), 0.0  }
  0x6c   : > { %s535_s22 = smul.u32 %s534_s7, %s1768_s17  ;;  %585 = vst [vmem:[#allocation2] sm:$0xff] (!%p1039_p5), %v1378_v0  ;;  %586 = vst [vmem:[#allocation2 + $0x8] sm:$0xff] (!%p1039_p5), %v1378_v0 }
  0x6d   : > { %584 = sbr.rel (%p1039_p5) target bundleno = 116 (0x74), region = 52 }
  0x6e   : > { %s536_s14 = sadd.s32 %s1353_s21, %s535_s22 }
  0x6f   : > { %s1036_s10 = sshll.u32 %s536_s14, 1 }
  0x70   : > { %p538_p11 = scmp.lt.s32.totalorder %s1036_s10, 3 }
  0x72   : > { %s1770_s10 = smov (!%p538_p11, %s1036_s10), 3 }
  0x73   : > { %s540_s15 = scalar_lea.vmem %s1724_s2, %s1770_s10 }
  0x74 PF: > { %v590_v1 = vld [vmem:[%s1584_s12 + $0x8] sm:$0xff]  ;;  %v592_v2 = vld [vmem:[%s1584_s12 + $0x18] sm:$0xff]  ;;  %v589_v3 = vld [vmem:[%s1584_s12] sm:$0xff]  ;;  %v1379_v8 = vmov 0.0   ;;  %p1040_p6 = scmp.ne.s32.totalorder %s1353_s21, 1 }
  0x75   : > { %v1084_v4 = vpack.c.bf16 %v592_v2, %v590_v1  ;;  %v591_v5 = vld [vmem:[%s1584_s12 + $0x10] sm:$0xff]  ;;  %v594_v6 = vld [vmem:[%s1584_s12 + $0x28] sm:$0xff]  ;;  %v596_v7 = vld [vmem:[%s1584_s12 + $0x38] sm:$0xff]  ;;  %697 = vmatprep.mubr.f32.mxu0 %v1379_v8 }
  0x76   : > { %v1086_v9 = vpack.c.bf16 %v591_v5, %v589_v3  ;;  %v1088_v10 = vpack.c.bf16 %v596_v7, %v594_v6  ;;  %v593_v11 = vld [vmem:[%s1584_s12 + $0x20] sm:$0xff]  ;;  %v595_v12 = vld [vmem:[%s1584_s12 + $0x30] sm:$0xff]  ;;  %v598_v13 = vld [vmem:[%s1584_s12 + $0x48] sm:$0xff] }
  0x77   : > { %1085 = vmatprep.subr.bf16.mxu0 %v1084_v4  ;;  %v600_v14 = vld [vmem:[%s1584_s12 + $0x58] sm:$0xff]  ;;  %v1090_v15 = vpack.c.bf16 %v595_v12, %v593_v11  ;;  %v597_v17 = vld [vmem:[%s1584_s12 + $0x40] sm:$0xff]  ;;  %v599_v18 = vld [vmem:[%s1584_s12 + $0x50] sm:$0xff] }
  0x78   : > { %1087 = vmatpush1.bf16.msra.mxu0 %v1086_v9  ;;  %v1092_v16 = vpack.c.bf16 %v600_v14, %v598_v13  ;;  %v602_v19 = vld [vmem:[%s1584_s12 + $0x68] sm:$0xff]  ;;  %v604_v20 = vld [vmem:[%s1584_s12 + $0x78] sm:$0xff]  ;;  %v1094_v21 = vpack.c.bf16 %v599_v18, %v597_v17  ;;  %v601_v23 = vld [vmem:[%s1584_s12 + $0x60] sm:$0xff] }
  0x79   : > { %1089 = vmatprep.subr.bf16.mxu0 %v1088_v10  ;;  %v1096_v22 = vpack.c.bf16 %v604_v20, %v602_v19  ;;  %v603_v24 = vld [vmem:[%s1584_s12 + $0x70] sm:$0xff]  ;;  %v606_v25 = vld [vmem:[%s1584_s12 + $0x88] sm:$0xff]  ;;  %v608_v26 = vld [vmem:[%s1584_s12 + $0x98] sm:$0xff] }
  0x7a   : > { %v605_v27 = vld [vmem:[%s1584_s12 + $0x80] sm:$0xff]  ;;  %v607_v28 = vld [vmem:[%s1584_s12 + $0x90] sm:$0xff]  ;;  %v749_v30 = vld [vmem:[%s1590_s6 + $0x88] sm:$0xff]  ;;  %v1098_v31 = vpack.c.bf16 %v603_v24, %v601_v23  ;;  %v1100_v37 = vpack.c.bf16 %v608_v26, %v606_v25 }
  0x7b   : > { %v748_v29 = vld [vmem:[%s1590_s6 + $0x80] sm:$0xff]  ;;  %v610_v32 = vld [vmem:[%s1584_s12 + $0xa8] sm:$0xff]  ;;  %v750_v36 = vld [vmem:[%s1590_s6 + $0x90] sm:$0xff]  ;;  %v1102_v47 = vpack.c.bf16 %v607_v28, %v605_v27 }
  0x7c   : > { %1091 = vmatpush1.bf16.msra.mxu0 %v1090_v15  ;;  %v1116_v33 = vpack.c.bf16 %v749_v30, %v748_v29  ;;  %v732_v34 = vld [vmem:[%s1590_s6] sm:$0xff]  ;;  %v733_v35 = vld [vmem:[%s1590_s6 + $0x8] sm:$0xff]  ;;  %v751_v39 = vld [vmem:[%s1590_s6 + $0x98] sm:$0xff] }
  0x7d   : > { %1093 = vmatprep.subr.bf16.mxu0 %v1092_v16  ;;  %v1118_v38 = vpack.c.bf16 %v733_v35, %v732_v34  ;;  %v734_v40 = vld [vmem:[%s1590_s6 + $0x10] sm:$0xff]  ;;  %v735_v41 = vld [vmem:[%s1590_s6 + $0x18] sm:$0xff]  ;;  %v1120_v43 = vpack.c.bf16 %v751_v39, %v750_v36  ;;  %v752_v44 = vld [vmem:[%s1590_s6 + $0xa0] sm:$0xff]  ;;  %v623_v36 = vlaneseq }
  0x7e   : > { %v612_v42 = vld [vmem:[%s1584_s12 + $0xb8] sm:$0xff]  ;;  %1117 = vmatprep.subr.bf16.mxu1 %v1116_v33  ;;  %v753_v45 = vld [vmem:[%s1590_s6 + $0xa8] sm:$0xff]  ;;  %v1122_v46 = vpack.c.bf16 %v735_v41, %v734_v40  ;;  %v736_v49 = vld [vmem:[%s1590_s6 + $0x20] sm:$0xff] }
  0x7f   : > { %1119 = vmatpush3.bf16.msra.mxu1 %v1118_v38  ;;  %v1124_v48 = vpack.c.bf16 %v753_v45, %v752_v44  ;;  %v737_v50 = vld [vmem:[%s1590_s6 + $0x28] sm:$0xff]  ;;  %v1104_v51 = vpack.c.bf16 %v612_v42, %v610_v32  ;;  %v609_v52 = vld [vmem:[%s1584_s12 + $0xa0] sm:$0xff]  ;;  %v611_v53 = vld [vmem:[%s1584_s12 + $0xb0] sm:$0xff] }
  0x80   : > { %1095 = vmatpush1.bf16.msra.mxu0 %v1094_v21  ;;  %1121 = vmatprep.subr.bf16.mxu1 %v1120_v43  ;;  %v614_v54 = vld [vmem:[%s1584_s12 + $0xc8] sm:$0xff]  ;;  %v616_v55 = vld [vmem:[%s1584_s12 + $0xd8] sm:$0xff]  ;;  %v1126_v56 = vpack.c.bf16 %v737_v50, %v736_v49  ;;  %v1106_v57 = vpack.c.bf16 %v611_v53, %v609_v52  ;;  %v613_v59 = vld [vmem:[%s1584_s12 + $0xc0] sm:$0xff] }
  0x81   : > { %1097 = vmatprep.subr.bf16.mxu0 %v1096_v22  ;;  %v1108_v58 = vpack.c.bf16 %v616_v55, %v614_v54  ;;  %v615_v60 = vld [vmem:[%s1584_s12 + $0xd0] sm:$0xff]  ;;  %v618_v61 = vld [vmem:[%s1584_s12 + $0xe8] sm:$0xff]  ;;  %v620_v62 = vld [vmem:[%s1584_s12 + $0xf8] sm:$0xff] }
  0x82   : > { %v1110_v63 = vpack.c.bf16 %v615_v60, %v613_v59  ;;  %v1112_v0 = vpack.c.bf16 %v620_v62, %v618_v61  ;;  %v617_v1 = vld [vmem:[%s1584_s12 + $0xe0] sm:$0xff]  ;;  %v619_v2 = vld [vmem:[%s1584_s12 + $0xf0] sm:$0xff]  ;;  %v588_v5 = vld [vmem:[%s1604_s8 + $0x8] sm:$0xff] }
  0x83   : > { %1123 = vmatpush3.bf16.msra.mxu1 %v1122_v46  ;;  %v1114_v3 = vpack.c.bf16 %v619_v2, %v617_v1  ;;  %v587_v4 = vld [vmem:[%s1604_s8] sm:$0xff]  ;;  %v755_v7 = vld [vmem:[%s1590_s6 + $0xb8] sm:$0xff]  ;;  %v756_v13 = vld [vmem:[%s1590_s6 + $0xc0] sm:$0xff] }
  0x84   : > { %1099 = vmatpush1.bf16.msra.mxu0 %v1098_v31  ;;  %1125 = vmatprep.subr.bf16.mxu1 %v1124_v48  ;;  %v754_v6 = vld [vmem:[%s1590_s6 + $0xb0] sm:$0xff]  ;;  %v739_v11 = vld [vmem:[%s1590_s6 + $0x38] sm:$0xff]  ;;  %v757_v14 = vld [vmem:[%s1590_s6 + $0xc8] sm:$0xff] }
  0x85   : > { %1101 = vmatprep.subr.bf16.mxu0 %v1100_v37  ;;  %v1128_v9 = vpack.c.bf16 %v755_v7, %v754_v6  ;;  %v738_v10 = vld [vmem:[%s1590_s6 + $0x30] sm:$0xff]  ;;  %v1132_v15 = vpack.c.bf16 %v757_v14, %v756_v13  ;;  %v741_v16 = vld [vmem:[%s1590_s6 + $0x48] sm:$0xff]  ;;  %v759_v19 = vld [vmem:[%s1590_s6 + $0xd8] sm:$0xff]  ;;  %v624_v37 = vshrl.u32 %v623_v36, 7 }
  0x86   : > { %v1130_v12 = vpack.c.bf16 %v739_v11, %v738_v10  ;;  %v758_v18 = vld [vmem:[%s1590_s6 + $0xd0] sm:$0xff]  ;;  %v743_v22 = vld [vmem:[%s1590_s6 + $0x58] sm:$0xff]  ;;  %v760_v24 = vld [vmem:[%s1590_s6 + $0xe0] sm:$0xff] }
  0x87   : > { %1127 = vmatpush3.bf16.msra.mxu1 %v1126_v56  ;;  %v1136_v20 = vpack.c.bf16 %v759_v19, %v758_v18  ;;  %v742_v21 = vld [vmem:[%s1590_s6 + $0x50] sm:$0xff]  ;;  %v761_v25 = vld [vmem:[%s1590_s6 + $0xe8] sm:$0xff]  ;;  %v744_v27 = vld [vmem:[%s1590_s6 + $0x60] sm:$0xff]  ;;  %v625_v38 = vsub.s32 0, %v624_v37  ;;  %v629_v40 = vsub.s32 1, %v624_v37 }
  0x88   : > { %1103 = vmatpush1.bf16.msra.mxu0 %v1102_v47  ;;  %1129 = vmatprep.subr.bf16.mxu1 %v1128_v9  ;;  %v1138_v23 = vpack.c.bf16 %v743_v22, %v742_v21  ;;  %v1140_v26 = vpack.c.bf16 %v761_v25, %v760_v24  ;;  %v745_v28 = vld [vmem:[%s1590_s6 + $0x68] sm:$0xff]  ;;  %v762_v30 = vld [vmem:[%s1590_s6 + $0xf0] sm:$0xff]  ;;  %v763_v31 = vld [vmem:[%s1590_s6 + $0xf8] sm:$0xff] }
  0x89   : > { %1105 = vmatprep.subr.bf16.mxu0 %v1104_v51  ;;  %v1142_v29 = vpack.c.bf16 %v745_v28, %v744_v27  ;;  %v1144_v32 = vpack.c.bf16 %v763_v31, %v762_v30  ;;  %v746_v33 = vld [vmem:[%s1590_s6 + $0x70] sm:$0xff]  ;;  %v747_v34 = vld [vmem:[%s1590_s6 + $0x78] sm:$0xff] }
  0x8a   : > { %v1146_v35 = vpack.c.bf16 %v747_v34, %v746_v33  ;;  %v621_v39 = vld [vmem:[%s540_s15] sm:$0x3]  ;;  %v731_v14 = vld [vmem:[#allocation2 + $0x8] sm:$0xff] }
  0x8b   : > { %1131 = vmatpush3.bf16.msra.mxu1 %v1130_v12  ;;  %v626_v41 = vrot.slane %v621_v39, %v625_v38  ;;  %v630_v42 = vrot.slane %v621_v39, %v629_v40  ;;  %v730_v9 = vld [vmem:[#allocation2] sm:$0xff] }
  0x8c   : > { %1107 = vmatpush1.bf16.msra.mxu0 %v1106_v57  ;;  %1133 = vmatprep.subr.bf16.mxu1 %v1132_v15  ;;  %v1041_v18 = vld [vmem:[%s1726_s4] ss:$0 sm:$0xff] (!%p1040_p6) }
  0x8d   : > { %1109 = vmatprep.subr.bf16.mxu0 %v1108_v58 }
  0x90   : > { %1111 = vmatpush1.bf16.msra.mxu0 %v1110_v63 }
  0x91   : > { %1113 = vmatprep.subr.bf16.mxu0 %v1112_v0 }
  0x94   : > { %1115 = vmatpush1.bf16.msra.mxu0 %v1114_v3 }
  0x97   : > { %698 = vmatmul.mubr.f32.vlgmr.msra.gmra.mrb[0].mxu0 %v587_v4 }
  0x98   : > { %703 = vmatprep.mubr.f32.mxu0 %v1379_v8  ;;  %v740_v8 = vld [vmem:[%s1590_s6 + $0x40] sm:$0xff] }
  0x99   : > { %v1134_v17 = vpack.c.bf16 %v741_v16, %v740_v8 }
  0x9b   : > { %704 = vmatmul.mubr.f32.gmra.mrb[2].mxu0 %v588_v5  ;;  %1135 = vmatpush3.bf16.msra.mxu1 %v1134_v17 }
  0x9c   : > { %1137 = vmatprep.subr.bf16.mxu1 %v1136_v20 }
  0x9f   : > { %1139 = vmatpush3.bf16.msra.mxu1 %v1138_v23 }
  0xa0   : > { %1141 = vmatprep.subr.bf16.mxu1 %v1140_v26 }
  0xa3   : > { %1143 = vmatpush3.bf16.msra.mxu1 %v1142_v29 }
  0xa4   : > { %1145 = vmatprep.subr.bf16.mxu1 %v1144_v32 }
  0xa7   : > { %1147 = vmatpush3.bf16.msra.mxu1 %v1146_v35 }
 0x16a   : > { %v699_v43 = vpop.f32.mrb[0].mxu0 }
 0x16b   : > { %v700_v44 = vadd.f32 %v699_v43, %v626_v41  ;;  %v701_v45 = vpop.f32.mrb[1].mxu0 }
 0x16c   : > { %v702_v46 = vadd.f32 %v701_v45, %v630_v42 }
 0x16d   : > { %v714_v47 = vmul.f32 0.70710677, %v700_v44  ;;  %v710_v60 = vmul.f32 0.5, %v700_v44 }
 0x16e   : > { %v715_v48 = vmul.f32 0.70710677, %v702_v46  ;;  %v705_v49 = vpop.f32.mrb[2].mxu0  ;;  %v711_v58 = vmul.f32 0.5, %v702_v46 }
 0x16f   : > { %1231 = verf.f32 %v714_v47  ;;  %v706_v50 = vadd.f32 %v705_v49, %v626_v41  ;;  %v707_v51 = vpop.f32.mrb[3].mxu0 }
 0x170   : > { %1233 = verf.f32 %v715_v48  ;;  %v708_v52 = vadd.f32 %v707_v51, %v630_v42 }
 0x171   : > { %v716_v53 = vmul.f32 0.70710677, %v706_v50  ;;  %v712_v4 = vmul.f32 0.5, %v706_v50 }
 0x172   : > { %v717_v54 = vmul.f32 0.70710677, %v708_v52  ;;  %v713_v2 = vmul.f32 0.5, %v708_v52 }
 0x173   : > { %1235 = verf.f32 %v716_v53 }
 0x174   : > { %1237 = verf.f32 %v717_v54 }
 0x179   : > { %v1232_v55 = vpop.eup %1231 }
 0x17a   : > { %v1234_v56 = vpop.eup %1233  ;;  %v722_v57 = vadd.f32 1.0, %v1232_v55 }
 0x17b   : > { %v723_v59 = vadd.f32 1.0, %v1234_v56 }
 0x17c   : > { %v726_v1 = vmul.f32 %v722_v57, %v710_v60 }
 0x17d   : > { %v1236_v61 = vpop.eup %1235  ;;  %v727_v62 = vmul.f32 %v723_v59, %v711_v58 }
 0x17e   : > { %v1238_v63 = vpop.eup %1237  ;;  %v724_v0 = vadd.f32 1.0, %v1236_v61 }
 0x17f   : > { %v725_v3 = vadd.f32 1.0, %v1238_v63  ;;  %828 = vmatprep.mubr.f32.mxu1 %v727_v62 }
 0x180   : > { %829 = vmatmul.mubr.f32.vlgmr.msra.gmra.mrb[0].mxu1 %v726_v1  ;;  %v728_v6 = vmul.f32 %v724_v0, %v712_v4 }
 0x181   : > { %v729_v5 = vmul.f32 %v725_v3, %v713_v2 }
 0x183   : > { %833 = vmatprep.mubr.f32.mxu1 %v729_v5 }
 0x184   : > { %834 = vmatmul.mubr.f32.gmra.mrb[2].mxu1 %v728_v6 }
 0x253   : > { %v1078_v7 = vpop.f32.mrb[0].mxu1 }
 0x254   : > { %v1079_v10 = vpop.f32.mrb[1].mxu1 }
 0x255   : > { %v1080_v11 = vadd.f32 %v1079_v10, %v1078_v7 }
 0x257   : > { %v839_v12 = vadd.f32 %v1080_v11, %v730_v9  ;;  %v1081_v13 = vpop.f32.mrb[2].mxu1  ;;  %846 = sbr.rel (%p1040_p6) target bundleno = 616 (0x268), region = 56 }
 0x258   : > { %v1082_v15 = vpop.f32.mrb[3].mxu1 }
 0x259   : > { %841 = vst [vmem:[#allocation2] sm:$0xff] %v839_v12  ;;  %v1083_v8 = vadd.f32 %v1082_v15, %v1081_v13 }
 0x25b   : > { %v840_v16 = vadd.f32 %v1083_v8, %v731_v14 }
 0x25d   : > { %842 = vst [vmem:[#allocation2 + $0x8] sm:$0xff] %v840_v16 }
 0x260   : > { %v847_v17 = vld [vmem:[#allocation2] sm:$0xff] }
 0x261   : > { %v856_v20 = vadd.f32 %v1041_v18, %v847_v17 }
 0x263   : > { %858 = vst [vmem:[%s1609_s29] sm:$0xff] %v856_v20 }
 0x264   : > { %v848_v19 = vld [vmem:[#allocation2 + $0x8] sm:$0xff] }
 0x265   : > { %v857_v21 = vadd.f32 %v1041_v18, %v848_v19 }
 0x267   : > { %859 = vst [vmem:[%s1609_s29 + $0x8] sm:$0xff] %v857_v21 }
 0x268 PF: > { %s21_s25 = sadd.s32 1, %s1369_s25   ;;  %s1743_s21 = smov %s1492_s18 }
 0x269   : > { %p18_p3 = scmp.ge.s32.totalorder %s21_s25, 6   ;;  %s1744_s1 = sld [smem:[#allocation9_spill]] }
 0x26a   : > { %s1745_s28 = sld [smem:[#allocation10_spill]]  ;;  %s1746_s18 = smov %s1345_s19 }
 0x26b   : > { %s1747_s19 = smov %s1349_s20  ;;  %s1748_s20 = smov %s1743_s21 }
 0x26c   : > { %s1749_s21 = smov %s1361_s23  ;;  %s1750_s22 = smov %s1365_s24 }
 0x26d   :  { %20 = sbr.rel (!%p18_p3) target bundleno = 9 (0x9), region = 107 }
 0x26f   : > { %s1751_s23 = smov %s1744_s1 }
 0x270   : > { %s1752_s24 = smov %s1745_s28 }
 0x274   :  { %882 = vsyncpa [#allocation4], 1 }
 0x275   :  { %884 = vsyncpa [#allocation4 + $0x1], 1 }
 0x276   :  { %885 = vsyncpa [#allocation6], 1 }
 0x277   :  { %887 = vsyncpa [#allocation6 + $0x1], 1 }

</bundles_post_ra>
